<compile_context>
chip_gen: v7x
topology: tpu7x:2x2x1
jax: 0.10.0
libtpu: 0.0.40
codegen_flags: <defaults>
</compile_context>

<pallas_src>
import jax
import jax.numpy as jnp
from jax.experimental import pallas as pl
from jax.experimental.pallas import tpu as pltpu


def _linear_kernel(x_ref, w_ref, b_ref, o_ref):
    # x_ref: (TM, IN)    activation tile
    # w_ref: (IN, OUT)   weight pre-transposed to canonical (K, N) layout
    # b_ref: (1, OUT)    bias row (broadcast over the tile)
    acc = jnp.dot(x_ref[...], w_ref[...], preferred_element_type=jnp.float32)
    o_ref[...] = (acc + b_ref[...]).astype(o_ref.dtype)


def prepare_linear_params(weight, bias):
    """One-time (parameter-init) prep.

    Transposes W from PyTorch (OUT, IN) to (IN, OUT) so the kernel feeds the
    MXU a canonical [M,K]x[K,N] contraction, and reshapes bias to a (1, OUT)
    row for in-kernel broadcast.  Hoisted out of the per-call forward path.
    """
    w_t = jnp.asarray(weight).T            # (IN, OUT)
    b2d = jnp.asarray(bias).reshape(1, -1)  # (1, OUT)
    return w_t, b2d


def linear_forward(x, w_t, b2d, *, block_batch=2048):
    """Pallas equivalent of torch.nn.Linear(input_size, output_size)(x).

    Args:
      x:    (batch, input_size)  float32
      w_t:  (input_size, output_size) float32 -- from prepare_linear_params
      b2d:  (1, output_size)          float32 -- from prepare_linear_params
    Returns:
      (batch, output_size) float32
    """
    batch, in_size = x.shape
    out_size = w_t.shape[1]

    if batch <= block_batch:
        # Single invocation, no grid: whole operands resident in VMEM,
        # no per-step pipeline setup/teardown.
        return pl.pallas_call(
            _linear_kernel,
            out_shape=jax.ShapeDtypeStruct((batch, out_size), x.dtype),
            in_specs=[
                pl.BlockSpec(memory_space=pltpu.MemorySpace.VMEM),
                pl.BlockSpec(memory_space=pltpu.MemorySpace.VMEM),
                pl.BlockSpec(memory_space=pltpu.MemorySpace.VMEM),
            ],
            out_specs=pl.BlockSpec(memory_space=pltpu.MemorySpace.VMEM),
        )(x, w_t, b2d)

    # Grid path: tile only the batch axis.  Pick a balanced tile size with an
    # EVEN number of grid steps so the "parallel" axis lands work on both
    # TensorCores on v7x (neutral on v5e/v6e, which have 1 TC).
    n_steps = max(2, pl.cdiv(batch, block_batch))
    if n_steps % 2:
        n_steps += 1
    tm = ((pl.cdiv(batch, n_steps) + 7) // 8) * 8   # sublane-aligned tile
    n_steps = pl.cdiv(batch, tm)

    return pl.pallas_call(
        _linear_kernel,
        out_shape=jax.ShapeDtypeStruct((batch, out_size), x.dtype),
        grid_spec=pl.GridSpec(
            grid=(n_steps,),
            in_specs=[
                pl.BlockSpec((tm, in_size), lambda i: (i, 0)),
                # Constant index maps -> W / bias stay VMEM-resident.
                pl.BlockSpec((in_size, out_size), lambda i: (0, 0)),
                pl.BlockSpec((1, out_size), lambda i: (0, 0)),
            ],
            out_specs=pl.BlockSpec((tm, out_size), lambda i: (i, 0)),
        ),
        compiler_params=pltpu.CompilerParams(
            dimension_semantics=("parallel",),  # shards batch across TCs on v7x
        ),
    )(x, w_t, b2d)


if __name__ == "__main__":
    # Small shapes consistent with the module: input_size=32, output_size=16.
    batch, input_size, output_size = 8, 32, 16

    key = jax.random.PRNGKey(0)
    kx, kw, kb, kx2, kx3 = jax.random.split(key, 5)

    # Deterministic parameter init mirroring torch.nn.Linear default
    # (uniform in +/- 1/sqrt(input_size)).
    bound = 1.0 / (input_size ** 0.5)
    weight = jax.random.uniform(
        kw, (output_size, input_size), jnp.float32, minval=-bound, maxval=bound
    )
    bias = jax.random.uniform(
        kb, (output_size,), jnp.float32, minval=-bound, maxval=bound
    )

    # One-time parameter prep (transpose + bias reshape), outside the call path.
    w_t, b2d = prepare_linear_params(weight, bias)

    # --- Small-batch (no-grid) path ---
    x = jax.random.normal(kx, (batch, input_size), jnp.float32)
    out = linear_forward(x, w_t, b2d)
    jax.block_until_ready(out)
    ref = x @ weight.T + bias
    assert out.shape == (batch, output_size)
    assert jnp.allclose(out, ref, atol=1e-5, rtol=1e-5)

    # --- Large-batch (batch-tiled, even parallel grid: 2 x 2048) path ---
    big_batch = 4096
    x_big = jax.random.normal(kx2, (big_batch, input_size), jnp.float32)
    out_big = linear_forward(x_big, w_t, b2d)
    jax.block_until_ready(out_big)
    ref_big = x_big @ weight.T + bias
    assert out_big.shape == (big_batch, output_size)
    assert jnp.allclose(out_big, ref_big, atol=1e-5, rtol=1e-5)

    # --- Ragged (non-divisible) batch: exercises Pallas boundary clamping ---
    rag_batch = 2309
    x_rag = jax.random.normal(kx3, (rag_batch, input_size), jnp.float32)
    out_rag = linear_forward(x_rag, w_t, b2d)
    jax.block_until_ready(out_rag)
    ref_rag = x_rag @ weight.T + bias
    assert out_rag.shape == (rag_batch, output_size)
    assert jnp.allclose(out_rag, ref_rag, atol=1e-5, rtol=1e-5)

    print("KERNEL_OK")
</pallas_src>

<mosaic_0001>
module attributes {stable_mosaic.version = 11 : i64} {
  func.func @_linear_kernel(%arg0: memref<8x32xf32, #tpu.memory_space<vmem>>, %arg1: memref<32x16xf32, #tpu.memory_space<vmem>>, %arg2: memref<1x16xf32, #tpu.memory_space<vmem>>, %arg3: memref<8x16xf32, #tpu.memory_space<vmem>>) attributes {dimension_semantics = [], scalar_prefetch = 0 : i64, scratch_operands = 0 : i64, tpu.core_type = #tpu.core_type<tc>} {
    %c0 = arith.constant 0 : index
    %c0_0 = arith.constant 0 : index
    %0 = vector.load %arg0[%c0, %c0_0] : memref<8x32xf32, #tpu.memory_space<vmem>>, vector<8x32xf32>
    %c0_1 = arith.constant 0 : index
    %c0_2 = arith.constant 0 : index
    %1 = vector.load %arg1[%c0_1, %c0_2] : memref<32x16xf32, #tpu.memory_space<vmem>>, vector<32x16xf32>
    %cst = arith.constant dense<0.000000e+00> : vector<8x16xf32>
    %2 = tpu.matmul %0, %1, %cst {dimension_numbers = #tpu.dot_dimension_numbers<[1], [0], [0], [1], [0, 0, 1, 1], [], []>} : vector<8x32xf32>, vector<32x16xf32>, vector<8x16xf32> -> vector<8x16xf32>
    %c0_3 = arith.constant 0 : index
    %c0_4 = arith.constant 0 : index
    %3 = vector.load %arg2[%c0_3, %c0_4] : memref<1x16xf32, #tpu.memory_space<vmem>>, vector<1x16xf32>
    %4 = vector.broadcast %3 : vector<1x16xf32> to vector<8x16xf32>
    %5 = arith.addf %2, %4 : vector<8x16xf32>
    %c0_5 = arith.constant 0 : index
    %c0_6 = arith.constant 0 : index
    %6 = vector.load %arg3[%c0_5, %c0_6] : memref<8x16xf32, #tpu.memory_space<vmem>>, vector<8x16xf32>
    tpu.vector_store %arg3[%c0_5, %c0_6], %5 {strides = array<i32>} : memref<8x16xf32, #tpu.memory_space<vmem>>, vector<8x16xf32>,
    return
  }
}

</mosaic_0001>

<bundles_post_ra>
// kernel: tpu_custom_call.1
= control target key start
LH: loop header
LB: loop body
LE: loop exit
PB: predicated region body
PF: predicated region fallthrough
CT: control target
= control target key end

     0   :  { %v169_v3 = vmov 0.0|0.0   ;;  %vm170_vm0 = vmmov 0   ;;  %v171_v6 = vmov 0.0   ;;  %s223_s0 = inlined_call_operand.vmem [shape: f32[8,32], index: 0, kind: input, shape index: {}]   ;;  %s224_s1 = inlined_call_operand.vmem [shape: f32[32,16], index: 1, kind: input, shape index: {}]   ;;  %s225_s2 = inlined_call_operand.vmem [shape: f32[1,16], index: 2, kind: input, shape index: {}]   ;;  %s226_s3 = inlined_call_operand.hbm [shape: f32[8,16], index: 3, kind: output, shape index: {}]  }
   0x1   :  { %v16_v0 = vld [vmem:[%s224_s1] sm:$0xff]  ;;  %v17_v1 = vld [vmem:[%s224_s1 + $0x8] sm:$0xff]  ;;  %v18_v2 = vld [vmem:[%s224_s1 + $0x10] sm:$0xff]  ;;  %135 = vmatprep.subr.bf16.mxu0 %v169_v3  ;;  %132 = vmatprep.mubr.msk.f32.mxu0 %vm170_vm0, %v171_v6 }
   0x2   :  { %v136_v4 = vpack.c.bf16 %v17_v1, %v16_v0  ;;  %v19_v5 = vld [vmem:[%s224_s1 + $0x18] sm:$0xff] }
   0x3   :  { %8 = vsyncpa [#allocation3], 0  ;;  %v139_v7 = vpack.c.bf16 %v19_v5, %v18_v2  ;;  %v15_v8 = vld [vmem:[%s223_s0] sm:$0xff]  ;;  %vm27_vm1 = vcmask 261120   ;;  %s172_s24 = smov [#allocation2]   ;;  %vm101_vm2 = vcmask 130048  }
   0x4   :  { %137 = vmatpush3.bf16.msra.mxu0 %v136_v4  ;;  %v117_v9 = vld [vmem:[%s225_s2] ss:$0 sm:$0xff]  ;;  %s109_s1 = sshll.u32 %s172_s24, 4  ;;  %s110_s1 = int_to_ptr.vmem [resolvable:$true] %s109_s1 }
   0x5   :  { %138 = vmatprep.subr.bf16.mxu0 %v169_v3  ;;  %s145_s25 = scalar_lea.vmem %s110_s1, 128  ;;  %p150_p1 = scmp.lt.s32.totalorder %s110_s1, %s110_s1 }
   0x6   :  { %p146_p0 = scmp.ne.s32.totalorder %s110_s1, %s145_s25  ;;  %p151_p2 = scmp.lt.s32.totalorder %s145_s25, %s145_s25 }
   0x8   :  { %140 = vmatpush3.bf16.msra.mxu0 %v139_v7  ;;  %p152_p3 = por %p151_p2, %p150_p1 }
   0xa   :  { %p153_p4 = pnand %p152_p3, %p146_p0 }
   0xb   :  { %133 = vmatmul.mubr.msk.f32.vlgmr.msra.gmra.mrb[0].mxu0 %vm27_vm1, %v15_v8 }
  0xde   :  { %v97_v10 = vpop.f32.mrb[0].mxu0 }
  0xdf   :  { %v98_v11 = vadd.f32 %v117_v9, %v97_v10  ;;  %v134_v12 = vpop.f32.mrb[1].mxu0 }
  0xe1   :  { %102 = vst.msk [vmem:[#allocation2] sm:$0xff] %vm101_vm2, %v98_v11 }
  0xe2   :  { %156 = shalt.err (!%p153_p4)
}
  0xe3   :  { %s157_s27 = scalar_lea.hbm %s226_s3, 128 }
  0xe4   :  { %p158_p5 = scmp.ne.s32.totalorder %s226_s3, %s157_s27  ;;  %p161_p6 = scmp.lt.u32.totalorder %s157_s27, %s226_s3 }
  0xe6   :  { %p163_p7 = pnand %p161_p6, %p158_p5 }
  0xe8   :  { %166 = shalt.err (!%p163_p7)
}
  0xe9   :  { %112 = dma.vmem_to_hbm [thread:$0]  %s110_s1, 128, %s226_s3, [#allocation3]  }
  0xea   :  { %167 = dma.done.wait [#allocation3], 128  }
  0xeb   :  { %168 = vsyncadd [#allocation3], 4294967168 }
  0xec   :  { %116 = vsyncpa [#allocation3], 1 }

</bundles_post_ra>
